<compile_context>
chip_gen: v7x
topology: tpu7x:2x2x1
jax: 0.10.0
libtpu: 0.0.40
codegen_flags: <defaults>
</compile_context>

<pallas_src>
import jax
import jax.numpy as jnp
from jax.experimental import pallas as pl
from jax.experimental.pallas import tpu as pltpu

LN_EPS = 1e-5
PERM = (1, 0, 4, 3, 2, 6, 5)  # spin permutation; it is an involution


def _elu(x):
    # ELU(alpha=1).  The positive-branch exp may overflow to +inf, but it is
    # discarded by the select, so this is safe (no NaN).
    return jnp.where(x > 0, x, jnp.exp(x) - 1.0)


def _round_up(n, m):
    return ((n + m - 1) // m) * m


def mloptimizer_kernel(x_ref, w0p_ref, w12_ref, wfs_ref, ln2_ref, bf_ref,
                       out_ref):
    """One batch tile, both spin copies lane-packed into [m, 2H]."""
    H2 = w0p_ref.shape[1]          # 2H (static)
    H = H2 // 2
    inv_h = 1.0 / H

    # Packed LayerNorm affine params, each duplicated across the two lane
    # groups: rows [g0, b0, g1, b1, g2, b2], shape [6, 2H].
    ln = ln2_ref[...]
    g0, b0 = ln[0:1, :], ln[1:2, :]
    g1, b1 = ln[2:3, :], ln[3:4, :]
    g2, b2 = ln[4:5, :], ln[5:6, :]

    # Lane-group mask: 1.0 on the first H lanes (spin copy A), 0.0 on copy B.
    lane = jax.lax.broadcasted_iota(jnp.int32, (1, H2), 1)
    mask_a = (lane < H).astype(jnp.float32)                  # [1, 2H]

    def group_mean(t):
        # Per-32-lane-group mean of t, broadcast back over [m, 2H].
        s_a = jnp.sum(t * mask_a, axis=-1, keepdims=True)    # sum of group A
        s_b = jnp.sum(t, axis=-1, keepdims=True) - s_a       # sum of group B
        return (s_b + (s_a - s_b) * mask_a) * inv_h

    def ln_grouped(t, gamma, beta):
        c = t - group_mean(t)
        var = group_mean(c * c)                              # biased, like nn.LayerNorm
        return c * jax.lax.rsqrt(var + LN_EPS) * gamma + beta

    x = x_ref[...]                                           # [m, 8] (7 + zero pad)

    # Stem: one matmul against [w0 | w0[perm,:]] gives both spin copies
    # side-by-side along lanes (x @ w0[perm,:] == x[:, perm] @ w0).
    h = jnp.dot(x, w0p_ref[...], preferred_element_type=jnp.float32)  # [m, 2H]
    h = _elu(ln_grouped(h, g0, b0))

    # ResBlock (num_layers=4 -> one block); dropout is identity in eval mode.
    # Weights are block-diagonal [2H, 2H], so each lane group is an
    # independent copy of the original [H, H] linear.
    res = h
    o = jnp.dot(h, w12_ref[0], preferred_element_type=jnp.float32)
    o = _elu(ln_grouped(o, g1, b1))
    o = jnp.dot(o, w12_ref[1], preferred_element_type=jnp.float32)
    o = ln_grouped(o, g2, b2)
    h = _elu(o + res)

    # Head: two zero-padded [2H, nc] weights pick out each spin copy, so the
    # final spin average needs no lane slicing.
    # 1.05 * 2/(1+exp(-0.5*y)) == 1.05*(1+tanh(0.25*y)).
    bf = bf_ref[...]
    y_a = jnp.dot(h, wfs_ref[0], preferred_element_type=jnp.float32) + bf
    y_b = jnp.dot(h, wfs_ref[1], preferred_element_type=jnp.float32) + bf
    act_a = 1.05 * (1.0 + jnp.tanh(0.25 * y_a))
    act_b = 1.05 * (1.0 + jnp.tanh(0.25 * y_b))
    out_ref[...] = 0.5 * (act_a + act_b)


def mloptimizer_forward(x, params, *, block_m=2048):
    """x: [N, 7] float32.  Returns [N, nconstants] float32."""
    (w0, g0, b0, w1, g1, b1, w2, g2, b2, wf, bf) = params
    N = x.shape[0]
    H = w0.shape[1]
    nconst = wf.shape[1]
    f32 = jnp.float32

    # --- weight packing (done once in the wrapper, all tiny) -----------------
    perm = jnp.array(PERM, dtype=jnp.int32)
    # Stem: [w0 | w0[perm,:]] -> [7, 2H]; pad the contraction dim 7 -> 8.
    w0p = jnp.concatenate([w0, w0[perm, :]], axis=1)
    w0p = jnp.pad(w0p, ((0, 1), (0, 0)))                     # [8, 2H]

    zH = jnp.zeros((H, H), f32)

    def blockdiag(w):                                        # [H,H] -> [2H,2H]
        return jnp.concatenate(
            [jnp.concatenate([w, zH], axis=1),
             jnp.concatenate([zH, w], axis=1)], axis=0)

    w12 = jnp.stack([blockdiag(w1), blockdiag(w2)], axis=0)  # [2, 2H, 2H]

    znc = jnp.zeros((H, nconst), f32)
    wfs = jnp.stack([jnp.concatenate([wf, znc], axis=0),
                     jnp.concatenate([znc, wf], axis=0)], axis=0)  # [2, 2H, nc]

    dup = lambda p: jnp.concatenate([p, p], axis=1)          # [1,H] -> [1,2H]
    ln2 = jnp.concatenate([dup(g0), dup(b0), dup(g1), dup(b1),
                           dup(g2), dup(b2)], axis=0)        # [6, 2H]

    # --- input packing / padding ---------------------------------------------
    # Pad features 7 -> 8 so each row is a 32-byte aligned transfer.
    x8 = jnp.pad(x, ((0, 0), (0, 1)))

    # Large batch tiles amortize per-grid-step overhead; small batches use a
    # single minimal tile.  Padded zero rows are numerically safe (LN(0)=beta,
    # ELU finite) and are sliced off at the end.
    bm = min(block_m, _round_up(max(N, 1), 8))
    n_pad = (-N) % bm
    x_p = jnp.pad(x8, ((0, n_pad), (0, 0))) if n_pad else x8
    Np = N + n_pad
    grid = (Np // bm,)

    def full_spec(arr):
        nd = arr.ndim
        return pl.BlockSpec(arr.shape, lambda i, _nd=nd: (0,) * _nd)

    out = pl.pallas_call(
        mloptimizer_kernel,
        out_shape=jax.ShapeDtypeStruct((Np, nconst), jnp.float32),
        grid_spec=pltpu.PrefetchScalarGridSpec(
            num_scalar_prefetch=0,
            grid=grid,
            in_specs=[
                pl.BlockSpec((bm, 8), lambda i: (i, 0)),     # x tile
                full_spec(w0p),                               # [8, 2H]
                full_spec(w12),                               # [2, 2H, 2H]
                full_spec(wfs),                               # [2, 2H, nc]
                full_spec(ln2),                               # [6, 2H]
                full_spec(bf),                                # [1, nc]
            ],
            out_specs=pl.BlockSpec((bm, nconst), lambda i: (i, 0)),
        ),
        compiler_params=pltpu.CompilerParams(
            dimension_semantics=("parallel",),
            vmem_limit_bytes=32 * 1024 * 1024),
    )(x_p, w0p, w12, wfs, ln2, bf)
    return out[:N] if n_pad else out


def init_params(key, h_dim, nconstants):
    """Deterministic synthetic parameters (PyTorch-like layout, pre-transposed)."""
    ks = jax.random.split(key, 5)
    scale = 0.1
    w0 = scale * jax.random.normal(ks[0], (7, h_dim), jnp.float32)
    w1 = scale * jax.random.normal(ks[1], (h_dim, h_dim), jnp.float32)
    w2 = scale * jax.random.normal(ks[2], (h_dim, h_dim), jnp.float32)
    wf = scale * jax.random.normal(ks[3], (h_dim, nconstants), jnp.float32)
    bf = scale * jax.random.normal(ks[4], (1, nconstants), jnp.float32)
    # LayerNorm affine params (PyTorch defaults gamma=1, beta=0), kept 2D [1, H].
    g0 = jnp.ones((1, h_dim), jnp.float32); b0 = jnp.zeros((1, h_dim), jnp.float32)
    g1 = jnp.ones((1, h_dim), jnp.float32); b1 = jnp.zeros((1, h_dim), jnp.float32)
    g2 = jnp.ones((1, h_dim), jnp.float32); b2 = jnp.zeros((1, h_dim), jnp.float32)
    return (w0, g0, b0, w1, g1, b1, w2, g2, b2, wf, bf)


def reference_forward(x, params):
    """Pure-JAX reference matching the PyTorch module (eval mode)."""
    (w0, g0, b0, w1, g1, b1, w2, g2, b2, wf, bf) = params

    def layernorm(h, gamma, beta):
        mu = jnp.mean(h, axis=-1, keepdims=True)
        var = jnp.mean((h - mu) ** 2, axis=-1, keepdims=True)
        return (h - mu) * jax.lax.rsqrt(var + LN_EPS) * gamma + beta

    def unsymm(xx):
        h = _elu(layernorm(xx @ w0, g0, b0))
        res = h
        o = _elu(layernorm(h @ w1, g1, b1))
        o = layernorm(o @ w2, g2, b2)
        h = _elu(o + res)
        y = h @ wf + bf
        return 1.05 * 2.0 / (1.0 + jnp.exp(-0.5 * y))

    perm = jnp.array(PERM, dtype=jnp.int32)
    return 0.5 * (unsymm(x) + unsymm(x[:, perm]))


if __name__ == "__main__":
    # Small shapes consistent with the module: num_layers=4 (-> 1 ResBlock),
    # h_dim=32, nconstants=4, batch=8, input feature dim fixed at 7.
    N, H, NCONST = 8, 32, 4

    key = jax.random.PRNGKey(0)
    kx, kp = jax.random.split(key)
    x = jax.random.normal(kx, (N, 7), jnp.float32)
    params = init_params(kp, H, NCONST)

    out = mloptimizer_forward(x, params)
    jax.block_until_ready(out)

    assert out.shape == (N, NCONST)
    ref = reference_forward(x, params)
    assert bool(jnp.allclose(out, ref, rtol=1e-5, atol=1e-5)), (
        f"max abs err {float(jnp.max(jnp.abs(out - ref)))}")
    # Output of 1.05 * dm21_sigmoid is in (0, 2.1); quick sanity check.
    assert bool(jnp.all(out > 0.0)) and bool(jnp.all(out < 2.1))
    print("KERNEL_OK")
</pallas_src>

<mosaic_0001>
module attributes {stable_mosaic.version = 11 : i64} {
  func.func @mloptimizer_kernel(%arg0: i32, %arg1: memref<8x8xf32, #tpu.memory_space<vmem>>, %arg2: memref<8x64xf32, #tpu.memory_space<vmem>>, %arg3: memref<2x64x64xf32, #tpu.memory_space<vmem>>, %arg4: memref<2x64x4xf32, #tpu.memory_space<vmem>>, %arg5: memref<6x64xf32, #tpu.memory_space<vmem>>, %arg6: memref<1x4xf32, #tpu.memory_space<vmem>>, %arg7: memref<8x4xf32, #tpu.memory_space<vmem>>) attributes {dimension_semantics = [#tpu.dimension_semantics<parallel>], iteration_bounds = array<i64: 1>, scalar_prefetch = 0 : i64, scratch_operands = 0 : i64, tpu.core_type = #tpu.core_type<tc>, window_params = [{transform_indices = @transform_0, window_bounds = array<i64: 8, 8>}, {pipeline_mode = #tpu.pipeline_mode<synchronous>, transform_indices = @transform_1, window_bounds = array<i64: 8, 64>}, {pipeline_mode = #tpu.pipeline_mode<synchronous>, transform_indices = @transform_2, window_bounds = array<i64: 2, 64, 64>}, {pipeline_mode = #tpu.pipeline_mode<synchronous>, transform_indices = @transform_3, window_bounds = array<i64: 2, 64, 4>}, {pipeline_mode = #tpu.pipeline_mode<synchronous>, transform_indices = @transform_4, window_bounds = array<i64: 6, 64>}, {pipeline_mode = #tpu.pipeline_mode<synchronous>, transform_indices = @transform_5, window_bounds = array<i64: 1, 4>}, {transform_indices = @transform_6, window_bounds = array<i64: 8, 4>}]} {
    %c0 = arith.constant 0 : index
    %c0_0 = arith.constant 0 : index
    %0 = vector.load %arg5[%c0, %c0_0] : memref<6x64xf32, #tpu.memory_space<vmem>>, vector<6x64xf32>
    %1 = vector.extract_strided_slice %0 {offsets = [0, 0], sizes = [1, 64], strides = [1, 1]} : vector<6x64xf32> to vector<1x64xf32>
    %2 = vector.extract_strided_slice %0 {offsets = [1, 0], sizes = [1, 64], strides = [1, 1]} : vector<6x64xf32> to vector<1x64xf32>
    %3 = vector.extract_strided_slice %0 {offsets = [2, 0], sizes = [1, 64], strides = [1, 1]} : vector<6x64xf32> to vector<1x64xf32>
    %4 = vector.extract_strided_slice %0 {offsets = [3, 0], sizes = [1, 64], strides = [1, 1]} : vector<6x64xf32> to vector<1x64xf32>
    %5 = vector.extract_strided_slice %0 {offsets = [4, 0], sizes = [1, 64], strides = [1, 1]} : vector<6x64xf32> to vector<1x64xf32>
    %6 = vector.extract_strided_slice %0 {offsets = [5, 0], sizes = [1, 64], strides = [1, 1]} : vector<6x64xf32> to vector<1x64xf32>
    %7 = tpu.iota {dimensions = array<i32: 1>} : vector<1x64xi32>
    %c32_i32 = arith.constant 32 : i32
    %8 = vector.broadcast %c32_i32 : i32 to vector<1x64xi32>
    %9 = arith.cmpi slt, %7, %8 : vector<1x64xi32>
    %10 = arith.extui %9 : vector<1x64xi1> to vector<1x64xi32>
    %11 = arith.sitofp %10 : vector<1x64xi32> to vector<1x64xf32>
    %c0_1 = arith.constant 0 : index
    %c0_2 = arith.constant 0 : index
    %12 = vector.load %arg1[%c0_1, %c0_2] : memref<8x8xf32, #tpu.memory_space<vmem>>, vector<8x8xf32>
    %c0_3 = arith.constant 0 : index
    %c0_4 = arith.constant 0 : index
    %13 = vector.load %arg2[%c0_3, %c0_4] : memref<8x64xf32, #tpu.memory_space<vmem>>, vector<8x64xf32>
    %cst = arith.constant dense<0.000000e+00> : vector<8x64xf32>
    %14 = tpu.matmul %12, %13, %cst {dimension_numbers = #tpu.dot_dimension_numbers<[1], [0], [0], [1], [0, 0, 1, 1], [], []>} : vector<8x8xf32>, vector<8x64xf32>, vector<8x64xf32> -> vector<8x64xf32>
    %15 = vector.broadcast %11 : vector<1x64xf32> to vector<8x64xf32>
    %16 = arith.mulf %14, %15 : vector<8x64xf32>
    %cst_5 = arith.constant dense<0.000000e+00> : vector<8xf32>
    %17 = vector.multi_reduction <add>, %16, %cst_5 [1] : vector<8x64xf32> to vector<8xf32>
    %18 = vector.shape_cast %17 : vector<8xf32> to vector<8x1xf32>
    %cst_6 = arith.constant dense<0.000000e+00> : vector<8xf32>
    %19 = vector.multi_reduction <add>, %14, %cst_6 [1] : vector<8x64xf32> to vector<8xf32>
    %20 = vector.shape_cast %19 : vector<8xf32> to vector<8x1xf32>
    %21 = arith.subf %20, %18 : vector<8x1xf32>
    %22 = arith.subf %18, %21 : vector<8x1xf32>
    %23 = vector.broadcast %22 : vector<8x1xf32> to vector<8x64xf32>
    %24 = vector.broadcast %11 : vector<1x64xf32> to vector<8x64xf32>
    %25 = arith.mulf %23, %24 : vector<8x64xf32>
    %26 = vector.broadcast %21 : vector<8x1xf32> to vector<8x64xf32>
    %27 = arith.addf %26, %25 : vector<8x64xf32>
    %cst_7 = arith.constant 3.125000e-02 : f32
    %28 = vector.broadcast %cst_7 : f32 to vector<8x64xf32>
    %29 = arith.mulf %27, %28 : vector<8x64xf32>
    %30 = arith.subf %14, %29 : vector<8x64xf32>
    %31 = arith.mulf %30, %30 : vector<8x64xf32>
    %32 = vector.broadcast %11 : vector<1x64xf32> to vector<8x64xf32>
    %33 = arith.mulf %31, %32 : vector<8x64xf32>
    %cst_8 = arith.constant dense<0.000000e+00> : vector<8xf32>
    %34 = vector.multi_reduction <add>, %33, %cst_8 [1] : vector<8x64xf32> to vector<8xf32>
    %35 = vector.shape_cast %34 : vector<8xf32> to vector<8x1xf32>
    %cst_9 = arith.constant dense<0.000000e+00> : vector<8xf32>
    %36 = vector.multi_reduction <add>, %31, %cst_9 [1] : vector<8x64xf32> to vector<8xf32>
    %37 = vector.shape_cast %36 : vector<8xf32> to vector<8x1xf32>
    %38 = arith.subf %37, %35 : vector<8x1xf32>
    %39 = arith.subf %35, %38 : vector<8x1xf32>
    %40 = vector.broadcast %39 : vector<8x1xf32> to vector<8x64xf32>
    %41 = vector.broadcast %11 : vector<1x64xf32> to vector<8x64xf32>
    %42 = arith.mulf %40, %41 : vector<8x64xf32>
    %43 = vector.broadcast %38 : vector<8x1xf32> to vector<8x64xf32>
    %44 = arith.addf %43, %42 : vector<8x64xf32>
    %cst_10 = arith.constant 3.125000e-02 : f32
    %45 = vector.broadcast %cst_10 : f32 to vector<8x64xf32>
    %46 = arith.mulf %44, %45 : vector<8x64xf32>
    %cst_11 = arith.constant 9.99999974E-6 : f32
    %47 = vector.broadcast %cst_11 : f32 to vector<8x64xf32>
    %48 = arith.addf %46, %47 : vector<8x64xf32>
    %49 = math.rsqrt %48 : vector<8x64xf32>
    %50 = arith.mulf %30, %49 : vector<8x64xf32>
    %51 = vector.broadcast %1 : vector<1x64xf32> to vector<8x64xf32>
    %52 = arith.mulf %50, %51 : vector<8x64xf32>
    %53 = vector.broadcast %2 : vector<1x64xf32> to vector<8x64xf32>
    %54 = arith.addf %52, %53 : vector<8x64xf32>
    %cst_12 = arith.constant 0.000000e+00 : f32
    %55 = vector.broadcast %cst_12 : f32 to vector<8x64xf32>
    %56 = arith.cmpf ogt, %54, %55 : vector<8x64xf32>
    %57 = math.exp %54 : vector<8x64xf32>
    %cst_13 = arith.constant 1.000000e+00 : f32
    %58 = vector.broadcast %cst_13 : f32 to vector<8x64xf32>
    %59 = arith.subf %57, %58 : vector<8x64xf32>
    %60 = arith.select %56, %54, %59 : vector<8x64xi1>, vector<8x64xf32>
    %c0_14 = arith.constant 0 : index
    %c0_15 = arith.constant 0 : index
    %c0_16 = arith.constant 0 : index
    %61 = vector.load %arg3[%c0_14, %c0_15, %c0_16] : memref<2x64x64xf32, #tpu.memory_space<vmem>>, vector<1x64x64xf32>
    %62 = vector.shape_cast %61 : vector<1x64x64xf32> to vector<64x64xf32>
    %cst_17 = arith.constant dense<0.000000e+00> : vector<8x64xf32>
    %63 = tpu.matmul %60, %62, %cst_17 {dimension_numbers = #tpu.dot_dimension_numbers<[1], [0], [0], [1], [0, 0, 1, 1], [], []>} : vector<8x64xf32>, vector<64x64xf32>, vector<8x64xf32> -> vector<8x64xf32>
    %64 = vector.broadcast %11 : vector<1x64xf32> to vector<8x64xf32>
    %65 = arith.mulf %63, %64 : vector<8x64xf32>
    %cst_18 = arith.constant dense<0.000000e+00> : vector<8xf32>
    %66 = vector.multi_reduction <add>, %65, %cst_18 [1] : vector<8x64xf32> to vector<8xf32>
    %67 = vector.shape_cast %66 : vector<8xf32> to vector<8x1xf32>
    %cst_19 = arith.constant dense<0.000000e+00> : vector<8xf32>
    %68 = vector.multi_reduction <add>, %63, %cst_19 [1] : vector<8x64xf32> to vector<8xf32>
    %69 = vector.shape_cast %68 : vector<8xf32> to vector<8x1xf32>
    %70 = arith.subf %69, %67 : vector<8x1xf32>
    %71 = arith.subf %67, %70 : vector<8x1xf32>
    %72 = vector.broadcast %71 : vector<8x1xf32> to vector<8x64xf32>
    %73 = vector.broadcast %11 : vector<1x64xf32> to vector<8x64xf32>
    %74 = arith.mulf %72, %73 : vector<8x64xf32>
    %75 = vector.broadcast %70 : vector<8x1xf32> to vector<8x64xf32>
    %76 = arith.addf %75, %74 : vector<8x64xf32>
    %cst_20 = arith.constant 3.125000e-02 : f32
    %77 = vector.broadcast %cst_20 : f32 to vector<8x64xf32>
    %78 = arith.mulf %76, %77 : vector<8x64xf32>
    %79 = arith.subf %63, %78 : vector<8x64xf32>
    %80 = arith.mulf %79, %79 : vector<8x64xf32>
    %81 = vector.broadcast %11 : vector<1x64xf32> to vector<8x64xf32>
    %82 = arith.mulf %80, %81 : vector<8x64xf32>
    %cst_21 = arith.constant dense<0.000000e+00> : vector<8xf32>
    %83 = vector.multi_reduction <add>, %82, %cst_21 [1] : vector<8x64xf32> to vector<8xf32>
    %84 = vector.shape_cast %83 : vector<8xf32> to vector<8x1xf32>
    %cst_22 = arith.constant dense<0.000000e+00> : vector<8xf32>
    %85 = vector.multi_reduction <add>, %80, %cst_22 [1] : vector<8x64xf32> to vector<8xf32>
    %86 = vector.shape_cast %85 : vector<8xf32> to vector<8x1xf32>
    %87 = arith.subf %86, %84 : vector<8x1xf32>
    %88 = arith.subf %84, %87 : vector<8x1xf32>
    %89 = vector.broadcast %88 : vector<8x1xf32> to vector<8x64xf32>
    %90 = vector.broadcast %11 : vector<1x64xf32> to vector<8x64xf32>
    %91 = arith.mulf %89, %90 : vector<8x64xf32>
    %92 = vector.broadcast %87 : vector<8x1xf32> to vector<8x64xf32>
    %93 = arith.addf %92, %91 : vector<8x64xf32>
    %cst_23 = arith.constant 3.125000e-02 : f32
    %94 = vector.broadcast %cst_23 : f32 to vector<8x64xf32>
    %95 = arith.mulf %93, %94 : vector<8x64xf32>
    %cst_24 = arith.constant 9.99999974E-6 : f32
    %96 = vector.broadcast %cst_24 : f32 to vector<8x64xf32>
    %97 = arith.addf %95, %96 : vector<8x64xf32>
    %98 = math.rsqrt %97 : vector<8x64xf32>
    %99 = arith.mulf %79, %98 : vector<8x64xf32>
    %100 = vector.broadcast %3 : vector<1x64xf32> to vector<8x64xf32>
    %101 = arith.mulf %99, %100 : vector<8x64xf32>
    %102 = vector.broadcast %4 : vector<1x64xf32> to vector<8x64xf32>
    %103 = arith.addf %101, %102 : vector<8x64xf32>
    %cst_25 = arith.constant 0.000000e+00 : f32
    %104 = vector.broadcast %cst_25 : f32 to vector<8x64xf32>
    %105 = arith.cmpf ogt, %103, %104 : vector<8x64xf32>
    %106 = math.exp %103 : vector<8x64xf32>
    %cst_26 = arith.constant 1.000000e+00 : f32
    %107 = vector.broadcast %cst_26 : f32 to vector<8x64xf32>
    %108 = arith.subf %106, %107 : vector<8x64xf32>
    %109 = arith.select %105, %103, %108 : vector<8x64xi1>, vector<8x64xf32>
    %c1 = arith.constant 1 : index
    %c0_27 = arith.constant 0 : index
    %c0_28 = arith.constant 0 : index
    %110 = vector.load %arg3[%c1, %c0_27, %c0_28] : memref<2x64x64xf32, #tpu.memory_space<vmem>>, vector<1x64x64xf32>
    %111 = vector.shape_cast %110 : vector<1x64x64xf32> to vector<64x64xf32>
    %cst_29 = arith.constant dense<0.000000e+00> : vector<8x64xf32>
    %112 = tpu.matmul %109, %111, %cst_29 {dimension_numbers = #tpu.dot_dimension_numbers<[1], [0], [0], [1], [0, 0, 1, 1], [], []>} : vector<8x64xf32>, vector<64x64xf32>, vector<8x64xf32> -> vector<8x64xf32>
    %113 = vector.broadcast %11 : vector<1x64xf32> to vector<8x64xf32>
    %114 = arith.mulf %112, %113 : vector<8x64xf32>
    %cst_30 = arith.constant dense<0.000000e+00> : vector<8xf32>
    %115 = vector.multi_reduction <add>, %114, %cst_30 [1] : vector<8x64xf32> to vector<8xf32>
    %116 = vector.shape_cast %115 : vector<8xf32> to vector<8x1xf32>
    %cst_31 = arith.constant dense<0.000000e+00> : vector<8xf32>
    %117 = vector.multi_reduction <add>, %112, %cst_31 [1] : vector<8x64xf32> to vector<8xf32>
    %118 = vector.shape_cast %117 : vector<8xf32> to vector<8x1xf32>
    %119 = arith.subf %118, %116 : vector<8x1xf32>
    %120 = arith.subf %116, %119 : vector<8x1xf32>
    %121 = vector.broadcast %120 : vector<8x1xf32> to vector<8x64xf32>
    %122 = vector.broadcast %11 : vector<1x64xf32> to vector<8x64xf32>
    %123 = arith.mulf %121, %122 : vector<8x64xf32>
    %124 = vector.broadcast %119 : vector<8x1xf32> to vector<8x64xf32>
    %125 = arith.addf %124, %123 : vector<8x64xf32>
    %cst_32 = arith.constant 3.125000e-02 : f32
    %126 = vector.broadcast %cst_32 : f32 to vector<8x64xf32>
    %127 = arith.mulf %125, %126 : vector<8x64xf32>
    %128 = arith.subf %112, %127 : vector<8x64xf32>
    %129 = arith.mulf %128, %128 : vector<8x64xf32>
    %130 = vector.broadcast %11 : vector<1x64xf32> to vector<8x64xf32>
    %131 = arith.mulf %129, %130 : vector<8x64xf32>
    %cst_33 = arith.constant dense<0.000000e+00> : vector<8xf32>
    %132 = vector.multi_reduction <add>, %131, %cst_33 [1] : vector<8x64xf32> to vector<8xf32>
    %133 = vector.shape_cast %132 : vector<8xf32> to vector<8x1xf32>
    %cst_34 = arith.constant dense<0.000000e+00> : vector<8xf32>
    %134 = vector.multi_reduction <add>, %129, %cst_34 [1] : vector<8x64xf32> to vector<8xf32>
    %135 = vector.shape_cast %134 : vector<8xf32> to vector<8x1xf32>
    %136 = arith.subf %135, %133 : vector<8x1xf32>
    %137 = arith.subf %133, %136 : vector<8x1xf32>
    %138 = vector.broadcast %137 : vector<8x1xf32> to vector<8x64xf32>
    %139 = vector.broadcast %11 : vector<1x64xf32> to vector<8x64xf32>
    %140 = arith.mulf %138, %139 : vector<8x64xf32>
    %141 = vector.broadcast %136 : vector<8x1xf32> to vector<8x64xf32>
    %142 = arith.addf %141, %140 : vector<8x64xf32>
    %cst_35 = arith.constant 3.125000e-02 : f32
    %143 = vector.broadcast %cst_35 : f32 to vector<8x64xf32>
    %144 = arith.mulf %142, %143 : vector<8x64xf32>
    %cst_36 = arith.constant 9.99999974E-6 : f32
    %145 = vector.broadcast %cst_36 : f32 to vector<8x64xf32>
    %146 = arith.addf %144, %145 : vector<8x64xf32>
    %147 = math.rsqrt %146 : vector<8x64xf32>
    %148 = arith.mulf %128, %147 : vector<8x64xf32>
    %149 = vector.broadcast %5 : vector<1x64xf32> to vector<8x64xf32>
    %150 = arith.mulf %148, %149 : vector<8x64xf32>
    %151 = vector.broadcast %6 : vector<1x64xf32> to vector<8x64xf32>
    %152 = arith.addf %150, %151 : vector<8x64xf32>
    %153 = arith.addf %152, %60 : vector<8x64xf32>
    %cst_37 = arith.constant 0.000000e+00 : f32
    %154 = vector.broadcast %cst_37 : f32 to vector<8x64xf32>
    %155 = arith.cmpf ogt, %153, %154 : vector<8x64xf32>
    %156 = math.exp %153 : vector<8x64xf32>
    %cst_38 = arith.constant 1.000000e+00 : f32
    %157 = vector.broadcast %cst_38 : f32 to vector<8x64xf32>
    %158 = arith.subf %156, %157 : vector<8x64xf32>
    %159 = arith.select %155, %153, %158 : vector<8x64xi1>, vector<8x64xf32>
    %c0_39 = arith.constant 0 : index
    %c0_40 = arith.constant 0 : index
    %160 = vector.load %arg6[%c0_39, %c0_40] : memref<1x4xf32, #tpu.memory_space<vmem>>, vector<1x4xf32>
    %c0_41 = arith.constant 0 : index
    %c0_42 = arith.constant 0 : index
    %c0_43 = arith.constant 0 : index
    %161 = vector.load %arg4[%c0_41, %c0_42, %c0_43] : memref<2x64x4xf32, #tpu.memory_space<vmem>>, vector<1x64x4xf32>
    %162 = vector.shape_cast %161 : vector<1x64x4xf32> to vector<64x4xf32>
    %cst_44 = arith.constant dense<0.000000e+00> : vector<8x4xf32>
    %163 = tpu.matmul %159, %162, %cst_44 {dimension_numbers = #tpu.dot_dimension_numbers<[1], [0], [0], [1], [0, 0, 1, 1], [], []>} : vector<8x64xf32>, vector<64x4xf32>, vector<8x4xf32> -> vector<8x4xf32>
    %164 = vector.broadcast %160 : vector<1x4xf32> to vector<8x4xf32>
    %165 = arith.addf %163, %164 : vector<8x4xf32>
    %c1_45 = arith.constant 1 : index
    %c0_46 = arith.constant 0 : index
    %c0_47 = arith.constant 0 : index
    %166 = vector.load %arg4[%c1_45, %c0_46, %c0_47] : memref<2x64x4xf32, #tpu.memory_space<vmem>>, vector<1x64x4xf32>
    %167 = vector.shape_cast %166 : vector<1x64x4xf32> to vector<64x4xf32>
    %cst_48 = arith.constant dense<0.000000e+00> : vector<8x4xf32>
    %168 = tpu.matmul %159, %167, %cst_48 {dimension_numbers = #tpu.dot_dimension_numbers<[1], [0], [0], [1], [0, 0, 1, 1], [], []>} : vector<8x64xf32>, vector<64x4xf32>, vector<8x4xf32> -> vector<8x4xf32>
    %169 = vector.broadcast %160 : vector<1x4xf32> to vector<8x4xf32>
    %170 = arith.addf %168, %169 : vector<8x4xf32>
    %cst_49 = arith.constant 2.500000e-01 : f32
    %171 = vector.broadcast %cst_49 : f32 to vector<8x4xf32>
    %172 = arith.mulf %171, %165 : vector<8x4xf32>
    %173 = math.tanh %172 : vector<8x4xf32>
    %cst_50 = arith.constant 1.000000e+00 : f32
    %174 = vector.broadcast %cst_50 : f32 to vector<8x4xf32>
    %175 = arith.addf %174, %173 : vector<8x4xf32>
    %cst_51 = arith.constant 1.050000e+00 : f32
    %176 = vector.broadcast %cst_51 : f32 to vector<8x4xf32>
    %177 = arith.mulf %176, %175 : vector<8x4xf32>
    %cst_52 = arith.constant 2.500000e-01 : f32
    %178 = vector.broadcast %cst_52 : f32 to vector<8x4xf32>
    %179 = arith.mulf %178, %170 : vector<8x4xf32>
    %180 = math.tanh %179 : vector<8x4xf32>
    %cst_53 = arith.constant 1.000000e+00 : f32
    %181 = vector.broadcast %cst_53 : f32 to vector<8x4xf32>
    %182 = arith.addf %181, %180 : vector<8x4xf32>
    %cst_54 = arith.constant 1.050000e+00 : f32
    %183 = vector.broadcast %cst_54 : f32 to vector<8x4xf32>
    %184 = arith.mulf %183, %182 : vector<8x4xf32>
    %185 = arith.addf %177, %184 : vector<8x4xf32>
    %cst_55 = arith.constant 5.000000e-01 : f32
    %186 = vector.broadcast %cst_55 : f32 to vector<8x4xf32>
    %187 = arith.mulf %186, %185 : vector<8x4xf32>
    %c0_56 = arith.constant 0 : index
    %c0_57 = arith.constant 0 : index
    %188 = vector.load %arg7[%c0_56, %c0_57] : memref<8x4xf32, #tpu.memory_space<vmem>>, vector<8x4xf32>
    tpu.vector_store %arg7[%c0_56, %c0_57], %187 {strides = array<i32>} : memref<8x4xf32, #tpu.memory_space<vmem>>, vector<8x4xf32>,
    return
  }
  func.func @transform_0(%arg0: i32) -> (i32, i32) {
    %c0_i32 = arith.constant 0 : i32
    %c0_i32_0 = arith.constant 0 : i32
    return %arg0, %c0_i32 : i32, i32
  }
  func.func @transform_1(%arg0: i32) -> (i32, i32) {
    %c0_i32 = arith.constant 0 : i32
    %c0_i32_0 = arith.constant 0 : i32
    %c0_i32_1 = arith.constant 0 : i32
    return %c0_i32, %c0_i32_0 : i32, i32
  }
  func.func @transform_2(%arg0: i32) -> (i32, i32, i32) {
    %c0_i32 = arith.constant 0 : i32
    %c0_i32_0 = arith.constant 0 : i32
    %c0_i32_1 = arith.constant 0 : i32
    %c0_i32_2 = arith.constant 0 : i32
    return %c0_i32, %c0_i32_0, %c0_i32_1 : i32, i32, i32
  }
  func.func @transform_3(%arg0: i32) -> (i32, i32, i32) {
    %c0_i32 = arith.constant 0 : i32
    %c0_i32_0 = arith.constant 0 : i32
    %c0_i32_1 = arith.constant 0 : i32
    %c0_i32_2 = arith.constant 0 : i32
    return %c0_i32, %c0_i32_0, %c0_i32_1 : i32, i32, i32
  }
  func.func @transform_4(%arg0: i32) -> (i32, i32) {
    %c0_i32 = arith.constant 0 : i32
    %c0_i32_0 = arith.constant 0 : i32
    %c0_i32_1 = arith.constant 0 : i32
    return %c0_i32, %c0_i32_0 : i32, i32
  }
  func.func @transform_5(%arg0: i32) -> (i32, i32) {
    %c0_i32 = arith.constant 0 : i32
    %c0_i32_0 = arith.constant 0 : i32
    %c0_i32_1 = arith.constant 0 : i32
    return %c0_i32, %c0_i32_0 : i32, i32
  }
  func.func @transform_6(%arg0: i32) -> (i32, i32) {
    %c0_i32 = arith.constant 0 : i32
    %c0_i32_0 = arith.constant 0 : i32
    return %arg0, %c0_i32 : i32, i32
  }
}

</mosaic_0001>

<bundles_post_ra>
// kernel: tpu_custom_call.1
= control target key start
LH: loop header
LB: loop body
LE: loop exit
PB: predicated region body
PF: predicated region fallthrough
CT: control target
= control target key end

     0   :  { %11 = vsyncpa [#allocation3], 0  ;;  %s1120_s0 = inlined_call_operand.vmem [shape: f32[8,8], index: 0, kind: input, shape index: {}]   ;;  %s1121_s1 = inlined_call_operand.hbm [shape: f32[8,64], index: 1, kind: input, shape index: {}]   ;;  %s1122_s2 = inlined_call_operand.vmem [shape: f32[2,64,64], index: 2, kind: input, shape index: {}]   ;;  %s1123_s3 = inlined_call_operand.vmem [shape: f32[2,64,4], index: 3, kind: input, shape index: {}]   ;;  %s1124_s4 = inlined_call_operand.hbm [shape: f32[6,64], index: 4, kind: input, shape index: {}]   ;;  %s1125_s5 = inlined_call_operand.vmem [shape: f32[1,4], index: 5, kind: input, shape index: {}]   ;;  %s1126_s6 = inlined_call_operand.vmem [shape: f32[8,4], index: 6, kind: output, shape index: {}]  }
   0x1   :  { %12 = vsyncpa [#allocation5], 0  ;;  %s873_s21 = smov [#allocation2]   ;;  %s874_s23 = smov [#allocation4]  }
   0x2   :  { %s21_s22 = sshll.u32 %s873_s21, 4  ;;  %s35_s24 = sshll.u32 %s874_s23, 4  ;;  %s22_s22 = int_to_ptr.vmem [resolvable:$true] %s21_s22  ;;  %s36_s24 = int_to_ptr.vmem [resolvable:$true] %s35_s24 }
   0x3   :  { %s825_s27 = scalar_lea.hbm %s1121_s1, 128 }
   0x4   :  { %p826_p0 = scmp.ne.s32.totalorder %s1121_s1, %s825_s27  ;;  %p829_p1 = scmp.lt.u32.totalorder %s825_s27, %s1121_s1 }
   0x6   :  { %p831_p2 = pnand %p829_p1, %p826_p0 }
   0x8   :  { %834 = shalt.err (!%p831_p2)
}
   0x9   :  { %s835_s8 = scalar_lea.vmem %s22_s22, 128  ;;  %p840_p4 = scmp.lt.s32.totalorder %s22_s22, %s22_s22 }
   0xa   :  { %p836_p3 = scmp.ne.s32.totalorder %s22_s22, %s835_s8  ;;  %p841_p5 = scmp.lt.s32.totalorder %s835_s8, %s835_s8 }
   0xc   :  { %p842_p6 = por %p841_p5, %p840_p4 }
   0xe   :  { %p843_p7 = pnand %p842_p6, %p836_p3 }
  0x10   :  { %846 = shalt.err (!%p843_p7)
}
  0x11   :  { %24 = dma.hbm_to_vmem [thread:$0]  %s1121_s1, 128, %s22_s22, [#allocation3]  }
  0x12   :  { %s847_s13 = scalar_lea.hbm %s1124_s4, 128 }
  0x13   :  { %p848_p8 = scmp.ne.s32.totalorder %s1124_s4, %s847_s13  ;;  %p851_p9 = scmp.lt.u32.totalorder %s847_s13, %s1124_s4 }
  0x15   :  { %p853_p10 = pnand %p851_p9, %p848_p8 }
  0x17   :  { %856 = shalt.err (!%p853_p10)
}
  0x18   :  { %s857_s18 = scalar_lea.vmem %s36_s24, 128  ;;  %p862_p12 = scmp.lt.s32.totalorder %s36_s24, %s36_s24 }
  0x19   :  { %p858_p11 = scmp.ne.s32.totalorder %s36_s24, %s857_s18  ;;  %p863_p13 = scmp.lt.s32.totalorder %s857_s18, %s857_s18 }
  0x1b   :  { %p864_p0 = por %p863_p13, %p862_p12 }
  0x1d   :  { %p865_p1 = pnand %p864_p0, %p858_p11 }
  0x1f   :  { %868 = shalt.err (!%p865_p1)
}
  0x20   :  { %38 = dma.hbm_to_vmem [thread:$0]  %s1124_s4, 128, %s36_s24, [#allocation5]  }
  0x21   :  { %869 = dma.done.wait [#allocation3], 128  }
  0x22   :  { %870 = vsyncadd [#allocation3], 4294967168 }
  0x23   :  { %871 = dma.done.wait [#allocation5], 128  }
  0x24   :  { %872 = vsyncadd [#allocation5], 4294967168  ;;  %v875_v0 = vmov 0.0   ;;  %vm876_vm0 = vmmov 0   ;;  %vm55_vm1 = vcmask 64512   ;;  %v54_v1 = vld [vmem:[#allocation2] sm:$0xff]  ;;  %v48_v3 = vlaneseq }
  0x25   :  { %675 = vmatprep.subr.mxu0 %v875_v0  ;;  %677 = vmatprep.mubr.msk.f32.mxu0 %vm876_vm0, %v875_v0  ;;  %v53_v2 = vld [vmem:[%s1120_s0] sm:$0xff]  ;;  %vm130_vm3 = vcmask 523264   ;;  %v175_v24 = vld [vmem:[%s1122_s2 + $0x8] sm:$0xff]  ;;  %v176_v25 = vld [vmem:[%s1122_s2 + $0x10] sm:$0xff]  ;;  %v877_v26 = vmov 0.0|0.0   ;;  %vm603_vm7 = vcmask 31744  }
  0x26   :  { %696 = vmatprep.mubr.msk.f32.mxu1 %vm876_vm0, %v875_v0  ;;  %676 = vmatpush3.msra.mxu0 %v54_v1  ;;  %v49_v4 = vand.u32 127, %v48_v3  ;;  %v174_v23 = vld [vmem:[%s1122_s2] sm:$0xff]  ;;  %v177_v28 = vld [vmem:[%s1122_s2 + $0x18] sm:$0xff]  ;;  %v179_v31 = vld [vmem:[%s1122_s2 + $0x28] sm:$0xff]  ;;  %v988_v44 = vshrl.u32 %v48_v3, 7 }
  0x27   :  { %678 = vmatmul.mubr.msk.f32.vlgmr.msra.gmra.mrb[0].mxu0 %vm55_vm1, %v53_v2  ;;  %756 = vmatprep.subr.bf16.mxu1 %v877_v26  ;;  %v757_v27 = vpack.c.bf16 %v175_v24, %v174_v23  ;;  %v760_v29 = vpack.c.bf16 %v177_v28, %v176_v25  ;;  %v178_v30 = vld [vmem:[%s1122_s2 + $0x20] sm:$0xff]  ;;  %v180_v33 = vld [vmem:[%s1122_s2 + $0x30] sm:$0xff]  ;;  %v181_v34 = vld [vmem:[%s1122_s2 + $0x38] sm:$0xff] }
  0x28   :  { %715 = vmatprep.mubr.msk.f32.mxu0 %vm876_vm0, %v875_v0  ;;  %vm50_vm2 = vcmp.lt.s32.totalorder %v49_v4, 32  ;;  %768 = vmatprep.subr.bf16.mxu0 %v877_v26  ;;  %v763_v32 = vpack.c.bf16 %v179_v31, %v178_v30  ;;  %v766_v35 = vpack.c.bf16 %v181_v34, %v180_v33  ;;  %v161_v45 = vsub.s32 0, %v988_v44  ;;  %v991_v46 = vld [vmem:[#allocation4] sm:$0x3f]  ;;  %v623_v23 = vld [vmem:[%s1122_s2 + $0x78] sm:$0xff] }
  0x29   :  { %v948_v5 = vsel %vm50_vm2, 1.0, %v875_v0  ;;  %758 = vmatpush3.bf16.msra.mxu1 %v757_v27  ;;  %v166_v47 = vsub.s32 1, %v988_v44  ;;  %v286_v34 = vsub.s32 2, %v988_v44 }
  0x2a   :  { %759 = vmatprep.subr.bf16.mxu1 %v877_v26  ;;  %v162_v48 = vrot.slane %v991_v46, %v161_v45 }
  0x2b   :  { %v167_v51 = vrot.slane %v991_v46, %v166_v47 }
  0x2d   :  { %761 = vmatpush3.bf16.msra.mxu1 %v760_v29 }
  0x2e   :  { %762 = vmatprep.subr.bf16.mxu1 %v877_v26 }
  0x31   :  { %764 = vmatpush3.bf16.msra.mxu1 %v763_v32 }
  0x32   :  { %765 = vmatprep.subr.bf16.mxu1 %v877_v26 }
  0x35   :  { %767 = vmatpush3.bf16.msra.mxu1 %v766_v35  ;;  %v291_v35 = vsub.s32 3, %v988_v44 }
  0x36   :  { %780 = vmatprep.subr.bf16.mxu1 %v877_v26 }
  0xfa   :  { %v125_v6 = vpop.f32.mrb[0].mxu0 }
  0xfb   :  { %v679_v7 = vpop.f32.mrb[1].mxu0  ;;  %v129_v8 = vmul.f32 %v948_v5, %v125_v6  ;;  %v134_v10 = vsel %vm130_vm3, %v125_v6, 0.0 }
  0xfd   :  { %v131_v9 = vsel %vm130_vm3, %v129_v8, 0.0 }
  0xfe   :  { %132 = vadd.xlane.f32.xlu0 %v131_v9 }
 0x102   :  { %135 = vadd.xlane.f32.xlu0 %v134_v10 }
 0x18b   :  { %v133_v11 = vpop.xlane.xlu0 %132 }
 0x18f   :  { %v136_v12 = vpop.xlane.xlu0 %135 }
 0x190   :  { %v137_v13 = vsub.f32 %v136_v12, %v133_v11 }
 0x192   :  { %v138_v14 = vsub.f32 %v133_v11, %v137_v13 }
 0x194   :  { %v139_v15 = vmul.f32 %v948_v5, %v138_v14  ;;  %v617_v14 = vld [vmem:[%s1122_s2 + $0x48] sm:$0xff] }
 0x196   :  { %v140_v16 = vadd.f32 %v139_v15, %v137_v13  ;;  %v616_v13 = vld [vmem:[%s1122_s2 + $0x40] sm:$0xff]  ;;  %v618_v15 = vld [vmem:[%s1122_s2 + $0x50] sm:$0xff] }
 0x198   :  { %v141_v17 = vmul.f32 0.03125, %v140_v16  ;;  %v769_v16 = vpack.c.bf16 %v617_v14, %v616_v13 }
 0x19a   :  { %v142_v18 = vsub.f32 %v125_v6, %v141_v17  ;;  %v619_v17 = vld [vmem:[%s1122_s2 + $0x58] sm:$0xff]  ;;  %770 = vmatpush3.bf16.msra.mxu0 %v769_v16  ;;  %v432_v16 = vld [vmem:[%s1123_s3 + $0x28] sm:$0xff] }
 0x19b   :  { %771 = vmatprep.subr.bf16.mxu0 %v877_v26 }
 0x19c   :  { %v143_v19 = vmul.f32 %v142_v18, %v142_v18 }
 0x19e   :  { %v144_v20 = vmul.f32 %v948_v5, %v143_v19  ;;  %v148_v22 = vsel %vm130_vm3, %v143_v19, 0.0  ;;  %v620_v19 = vld [vmem:[%s1122_s2 + $0x60] sm:$0xff] }
 0x1a0   :  { %v145_v21 = vsel %vm130_vm3, %v144_v20, 0.0  ;;  %v621_v20 = vld [vmem:[%s1122_s2 + $0x68] sm:$0xff] }
 0x1a1   :  { %146 = vadd.xlane.f32.xlu1 %v145_v21  ;;  %v775_v21 = vpack.c.bf16 %v621_v20, %v620_v19 }
 0x1a5   :  { %149 = vadd.xlane.f32.xlu1 %v148_v22  ;;  %v622_v22 = vld [vmem:[%s1122_s2 + $0x70] sm:$0xff] }
 0x1a6   :  { %v778_v24 = vpack.c.bf16 %v623_v23, %v622_v22  ;;  %v434_v22 = vld [vmem:[%s1123_s3 + $0x38] sm:$0xff]  ;;  %v634_v23 = vld [vmem:[%s1123_s3 + $0x70] sm:$0xff] }
 0x22e   :  { %v147_v36 = vpop.xlane.xlu1 %146 }
 0x232   :  { %v150_v37 = vpop.xlane.xlu1 %149 }
 0x233   :  { %v151_v38 = vsub.f32 %v150_v37, %v147_v36 }
 0x235   :  { %v152_v39 = vsub.f32 %v147_v36, %v151_v38  ;;  %v287_v36 = vrot.slane %v991_v46, %v286_v34 }
 0x237   :  { %v153_v40 = vmul.f32 %v948_v5, %v152_v39  ;;  %v292_v39 = vrot.slane %v991_v46, %v291_v35 }
 0x239   :  { %v154_v41 = vadd.f32 %v153_v40, %v151_v38 }
 0x23b   :  { %v155_v42 = vmul.f32 0.03125, %v154_v41 }
 0x23d   :  { %v156_v43 = vadd.f32 1e-05, %v155_v42 }
 0x23f   :  { %809 = vrsqrt.f32 %v156_v43 }
 0x249   :  { %v810_v49 = vpop.eup %809 }
 0x24a   :  { %v158_v50 = vmul.f32 %v810_v49, %v142_v18  ;;  %v772_v18 = vpack.c.bf16 %v619_v17, %v618_v15  ;;  %v431_v15 = vld [vmem:[%s1123_s3 + $0x20] sm:$0xff] }
 0x24b   :  { %v632_v17 = vld [vmem:[%s1123_s3 + $0x60] sm:$0xff]  ;;  %v787_v19 = vpack.c.bf16 %v432_v16, %v431_v15 }
 0x24c   :  { %v163_v52 = vmul.f32 %v162_v48, %v158_v50  ;;  %773 = vmatpush3.bf16.msra.mxu0 %v772_v18  ;;  %v633_v18 = vld [vmem:[%s1123_s3 + $0x68] sm:$0xff] }
 0x24d   :  { %774 = vmatprep.subr.bf16.mxu0 %v877_v26  ;;  %v799_v20 = vpack.c.bf16 %v633_v18, %v632_v17 }
 0x24e   :  { %v168_v53 = vadd.f32 %v167_v51, %v163_v52 }
 0x250   :  { %v170_v54 = vmul.f32 1.442695, %v168_v53  ;;  %vm169_vm4 = vcmp.gt.f32.partialorder %v168_v53, 0.0  ;;  %776 = vmatpush3.bf16.msra.mxu0 %v775_v21  ;;  %v433_v21 = vld [vmem:[%s1123_s3 + $0x30] sm:$0xff] }
 0x251   :  { %777 = vmatprep.subr.bf16.mxu0 %v877_v26 }
 0x252   :  { %811 = vpow2.f32 %v170_v54 }
 0x254   :  { %779 = vmatpush3.bf16.msra.mxu0 %v778_v24  ;;  %v635_v24 = vld [vmem:[%s1123_s3 + $0x78] sm:$0xff] }
 0x255   :  { %792 = vmatprep.subr.bf16.mxu0 %v877_v26 }
 0x25c   :  { %v812_v55 = vpop.eup %811 }
 0x25d   :  { %v613_v56 = vadd.f32 -1.0, %v812_v55 }
 0x25f   :  { %v996_v57 = vsel %vm169_vm4, %v168_v53, %v613_v56 }
 0x260   :  { %697 = vmatmul.mubr.msk.f32.vlgmr.msra.gmra.mrb[0].mxu1 %vm130_vm3, %v996_v57 }
 0x261   :  { %734 = vmatprep.mubr.msk.f32.mxu1 %vm876_vm0, %v875_v0 }
 0x333   :  { %v251_v58 = vpop.f32.mrb[0].mxu1 }
 0x334   :  { %v698_v59 = vpop.f32.mrb[1].mxu1  ;;  %v259_v60 = vsel %vm130_vm3, %v251_v58, 0.0  ;;  %v255_v61 = vmul.f32 %v948_v5, %v251_v58 }
 0x335   :  { %260 = vadd.xlane.f32.xlu1 %v259_v60 }
 0x336   :  { %v256_v62 = vsel %vm130_vm3, %v255_v61, 0.0 }
 0x337   :  { %257 = vadd.xlane.f32.xlu0 %v256_v62 }
 0x3c2   :  { %v261_v63 = vpop.xlane.xlu1 %260 }
 0x3c4   :  { %v258_v1 = vpop.xlane.xlu0 %257 }
 0x3c5   :  { %v262_v2 = vsub.f32 %v261_v63, %v258_v1 }
 0x3c7   :  { %v263_v3 = vsub.f32 %v258_v1, %v262_v2 }
 0x3c9   :  { %v264_v4 = vmul.f32 %v948_v5, %v263_v3  ;;  %v428_v3 = vld [vmem:[%s1123_s3 + $0x8] sm:$0xff] }
 0x3cb   :  { %v265_v6 = vadd.f32 %v264_v4, %v262_v2  ;;  %v427_v2 = vld [vmem:[%s1123_s3] sm:$0xff] }
 0x3cc   :  { %v628_v4 = vld [vmem:[%s1123_s3 + $0x40] sm:$0xff] }
 0x3cd   :  { %v266_v7 = vmul.f32 0.03125, %v265_v6  ;;  %v781_v6 = vpack.c.bf16 %v428_v3, %v427_v2 }
 0x3cf   :  { %v267_v8 = vsub.f32 %v251_v58, %v266_v7  ;;  %v629_v7 = vld [vmem:[%s1123_s3 + $0x48] sm:$0xff]  ;;  %782 = vmatpush3.bf16.msra.mxu1 %v781_v6 }
 0x3d0   :  { %783 = vmatprep.subr.bf16.mxu1 %v877_v26 }
 0x3d1   :  { %v268_v9 = vmul.f32 %v267_v8, %v267_v8 }
 0x3d3   :  { %v273_v10 = vsel %vm130_vm3, %v268_v9, 0.0  ;;  %v269_v11 = vmul.f32 %v948_v5, %v268_v9  ;;  %v430_v9 = vld [vmem:[%s1123_s3 + $0x18] sm:$0xff] }
 0x3d4   :  { %274 = vadd.xlane.f32.xlu1 %v273_v10  ;;  %v793_v10 = vpack.c.bf16 %v629_v7, %v628_v4 }
 0x3d5   :  { %v270_v12 = vsel %vm130_vm3, %v269_v11, 0.0  ;;  %v630_v11 = vld [vmem:[%s1123_s3 + $0x50] sm:$0xff] }
 0x3d6   :  { %271 = vadd.xlane.f32.xlu0 %v270_v12  ;;  %v631_v12 = vld [vmem:[%s1123_s3 + $0x58] sm:$0xff] }
 0x3d7   :  { %v796_v14 = vpack.c.bf16 %v631_v12, %v630_v11 }
 0x461   :  { %v275_v25 = vpop.xlane.xlu1 %274 }
 0x463   :  { %v272_v27 = vpop.xlane.xlu0 %271 }
 0x464   :  { %v276_v28 = vsub.f32 %v275_v25, %v272_v27  ;;  %v790_v25 = vpack.c.bf16 %v434_v22, %v433_v21 }
 0x466   :  { %v277_v29 = vsub.f32 %v272_v27, %v276_v28  ;;  %v802_v27 = vpack.c.bf16 %v635_v24, %v634_v23 }
 0x468   :  { %v278_v30 = vmul.f32 %v948_v5, %v277_v29 }
 0x46a   :  { %v279_v31 = vadd.f32 %v278_v30, %v276_v28 }
 0x46c   :  { %v280_v32 = vmul.f32 0.03125, %v279_v31 }
 0x46e   :  { %v281_v33 = vadd.f32 1e-05, %v280_v32 }
 0x470   :  { %813 = vrsqrt.f32 %v281_v33 }
 0x47a   :  { %v814_v37 = vpop.eup %813 }
 0x47b   :  { %v283_v38 = vmul.f32 %v814_v37, %v267_v8  ;;  %v429_v8 = vld [vmem:[%s1123_s3 + $0x10] sm:$0xff]  ;;  %v417_v37 = vsub.s32 5, %v988_v44 }
 0x47c   :  { %v784_v13 = vpack.c.bf16 %v430_v9, %v429_v8 }
 0x47d   :  { %v288_v40 = vmul.f32 %v287_v36, %v283_v38  ;;  %v412_v36 = vsub.s32 4, %v988_v44  ;;  %v626_v44 = vld [vmem:[%s1125_s5] ss:$0 sm:$0xff] }
 0x47e   :  { %785 = vmatpush3.bf16.msra.mxu1 %v784_v13 }
 0x47f   :  { %v293_v41 = vadd.f32 %v292_v39, %v288_v40  ;;  %786 = vmatprep.subr.bf16.mxu1 %v877_v26  ;;  %v413_v38 = vrot.slane %v991_v46, %v412_v36  ;;  %v418_v40 = vrot.slane %v991_v46, %v417_v37 }
 0x481   :  { %v295_v42 = vmul.f32 1.442695, %v293_v41  ;;  %vm294_vm5 = vcmp.gt.f32.partialorder %v293_v41, 0.0 }
 0x482   :  { %788 = vmatpush3.bf16.msra.mxu1 %v787_v19 }
 0x483   :  { %815 = vpow2.f32 %v295_v42  ;;  %789 = vmatprep.subr.bf16.mxu1 %v877_v26 }
 0x486   :  { %791 = vmatpush3.bf16.msra.mxu1 %v790_v25 }
 0x48d   :  { %v816_v43 = vpop.eup %815 }
 0x48e   :  { %v615_v45 = vadd.f32 -1.0, %v816_v43 }
 0x490   :  { %v298_v47 = vsel %vm294_vm5, %v293_v41, %v615_v45 }
 0x491   :  { %716 = vmatmul.mubr.msk.f32.vlgmr.msra.gmra.mrb[2].mxu0 %vm130_vm3, %v298_v47 }
 0x492   :  { %753 = vmatprep.mubr.msk.f32.mxu0 %vm876_vm0, %v875_v0  ;;  %794 = vmatpush3.bf16.msra.mxu0 %v793_v10 }
 0x493   :  { %795 = vmatprep.subr.bf16.mxu0 %v877_v26 }
 0x496   :  { %797 = vmatpush3.bf16.msra.mxu0 %v796_v14 }
 0x497   :  { %798 = vmatprep.subr.bf16.mxu0 %v877_v26 }
 0x49a   :  { %800 = vmatpush3.bf16.msra.mxu0 %v799_v20 }
 0x49b   :  { %801 = vmatprep.subr.bf16.mxu0 %v877_v26 }
 0x49e   :  { %803 = vmatpush3.bf16.msra.mxu0 %v802_v27 }
 0x564   :  { %v377_v48 = vpop.f32.mrb[2].mxu0 }
 0x565   :  { %v717_v49 = vpop.f32.mrb[3].mxu0  ;;  %v385_v50 = vsel %vm130_vm3, %v377_v48, 0.0  ;;  %v381_v51 = vmul.f32 %v948_v5, %v377_v48 }
 0x566   :  { %386 = vadd.xlane.f32.xlu1 %v385_v50 }
 0x567   :  { %v382_v52 = vsel %vm130_vm3, %v381_v51, 0.0 }
 0x568   :  { %383 = vadd.xlane.f32.xlu0 %v382_v52 }
 0x5f3   :  { %v387_v53 = vpop.xlane.xlu1 %386 }
 0x5f5   :  { %v384_v54 = vpop.xlane.xlu0 %383 }
 0x5f6   :  { %v388_v55 = vsub.f32 %v387_v53, %v384_v54 }
 0x5f8   :  { %v389_v56 = vsub.f32 %v384_v54, %v388_v55 }
 0x5fa   :  { %v390_v58 = vmul.f32 %v948_v5, %v389_v56 }
 0x5fc   :  { %v391_v59 = vadd.f32 %v390_v58, %v388_v55 }
 0x5fe   :  { %v392_v60 = vmul.f32 0.03125, %v391_v59 }
 0x600   :  { %v393_v61 = vsub.f32 %v377_v48, %v392_v60 }
 0x602   :  { %v394_v0 = vmul.f32 %v393_v61, %v393_v61 }
 0x604   :  { %v399_v62 = vsel %vm130_vm3, %v394_v0, 0.0  ;;  %v395_v63 = vmul.f32 %v948_v5, %v394_v0 }
 0x605   :  { %400 = vadd.xlane.f32.xlu1 %v399_v62 }
 0x606   :  { %v396_v1 = vsel %vm130_vm3, %v395_v63, 0.0 }
 0x607   :  { %397 = vadd.xlane.f32.xlu0 %v396_v1 }
 0x692   :  { %v401_v28 = vpop.xlane.xlu1 %400 }
 0x694   :  { %v398_v29 = vpop.xlane.xlu0 %397 }
 0x695   :  { %v402_v30 = vsub.f32 %v401_v28, %v398_v29 }
 0x697   :  { %v403_v31 = vsub.f32 %v398_v29, %v402_v30 }
 0x699   :  { %v404_v32 = vmul.f32 %v948_v5, %v403_v31 }
 0x69b   :  { %v405_v33 = vadd.f32 %v404_v32, %v402_v30 }
 0x69d   :  { %v406_v34 = vmul.f32 0.03125, %v405_v33 }
 0x69f   :  { %v407_v35 = vadd.f32 1e-05, %v406_v34 }
 0x6a1   :  { %817 = vrsqrt.f32 %v407_v35 }
 0x6ab   :  { %v818_v39 = vpop.eup %817 }
 0x6ac   :  { %v409_v26 = vmul.f32 %v818_v39, %v393_v61 }
 0x6ae   :  { %v414_v41 = vmul.f32 %v413_v38, %v409_v26 }
 0x6b0   :  { %v419_v42 = vadd.f32 %v418_v40, %v414_v41 }
 0x6b2   :  { %v420_v43 = vadd.f32 %v419_v42, %v996_v57 }
 0x6b4   :  { %v422_v45 = vmul.f32 1.442695, %v420_v43  ;;  %vm421_vm6 = vcmp.gt.f32.partialorder %v420_v43, 0.0 }
 0x6b6   :  { %819 = vpow2.f32 %v422_v45 }
 0x6c0   :  { %v820_v5 = vpop.eup %819 }
 0x6c1   :  { %v625_v47 = vadd.f32 -1.0, %v820_v5 }
 0x6c3   :  { %v425_v48 = vsel %vm421_vm6, %v420_v43, %v625_v47 }
 0x6c4   :  { %735 = vmatmul.mubr.msk.f32.vlgmr.msra.gmra.mrb[2].mxu1 %vm130_vm3, %v425_v48  ;;  %754 = vmatmul.mubr.msk.f32.vlgmr.msra.gmra.mrb[4].mxu0 %vm130_vm3, %v425_v48 }
 0x797   :  { %v510_v49 = vpop.f32.mrb[2].mxu1  ;;  %v589_v46 = vpop.f32.mrb[4].mxu0 }
 0x798   :  { %v511_v50 = vadd.f32 %v626_v44, %v510_v49  ;;  %v590_v51 = vadd.f32 %v626_v44, %v589_v46  ;;  %v736_v52 = vpop.f32.mrb[3].mxu1  ;;  %v755_v57 = vpop.f32.mrb[5].mxu0 }
 0x79a   :  { %v593_v53 = vmul.f32 0.25, %v511_v50  ;;  %v597_v54 = vmul.f32 0.25, %v590_v51 }
 0x79c   :  { %821 = vtanh.f32 %v593_v53 }
 0x79d   :  { %823 = vtanh.f32 %v597_v54 }
 0x7a6   :  { %v822_v55 = vpop.eup %821 }
 0x7a7   :  { %v824_v56 = vpop.eup %823  ;;  %v595_v58 = vadd.f32 1.0, %v822_v55 }
 0x7a8   :  { %v599_v59 = vadd.f32 1.0, %v824_v56 }
 0x7a9   :  { %v596_v60 = vmul.f32 1.05, %v595_v58 }
 0x7aa   :  { %v600_v61 = vmul.f32 1.05, %v599_v59 }
 0x7ac   :  { %v601_v0 = vadd.f32 %v600_v61, %v596_v60 }
 0x7ae   :  { %v602_v62 = vmul.f32 0.5, %v601_v0 }
 0x7b0   :  { %604 = vst.msk [vmem:[%s1126_s6] sm:$0xff] %vm603_vm7, %v602_v62 }
 0x7b1   :  { %609 = vsyncpa [#allocation3], 1 }
 0x7b2   :  { %610 = vsyncpa [#allocation5], 1 }

</bundles_post_ra>
